<compile_context>
chip_gen: v6e
topology: v6e:2x2x1
jax: 0.10.0
libtpu: 0.0.40
codegen_flags: <defaults>
</compile_context>

<pallas_src>
import functools

import jax
import jax.numpy as jnp
from jax.experimental import pallas as pl
from jax.experimental.pallas import tpu as pltpu


def _mixprop_kernel(x_ref, a_ref, w_ref, b_ref, o_ref, hstack_ref, *,
                    gdep, alpha, bc):
    """Fused mix-hop propagation + 1x1 conv for ALL batches at once.

    x_ref:      (B*C, NTp)               f32, batch folded into the MXU M dim
    a_ref:      (NTp, NTp)               bf16, (1 - alpha) * kron(A.T, I_T)
    w_ref:      (B*c_out, (gdep+1)*B*C)  bf16, batch-block-diagonal conv weight
    b_ref:      (B*c_out, 1)             f32 bias (tiled over batch)
    o_ref:      (B*c_out, NTp)           output (lane-dense)
    hstack_ref: ((gdep+1)*B*C, NTp)      f32 VMEM scratch holding all hop states
    """
    x = x_ref[...]                       # (B*C, NTp) f32
    a = a_ref[...]                       # (NTp, NTp) bf16 MXU operand
    ax = alpha * x                       # hoisted out of the hop loop (f32)

    # Hop 0 state.
    hstack_ref[0:bc, :] = x
    h = x.astype(jnp.bfloat16)

    # Serial propagation: one lane-dense bf16 MXU matmul per hop, f32 accumulate.
    # TODO(synk): on v5e, a_eff could be kept weight-stationary across hops via
    # pltpu.matmul_push_rhs / matmul_acc_lhs; using the portable jnp.dot path here.
    for k in range(1, gdep + 1):
        h_f32 = ax + jnp.dot(h, a, preferred_element_type=jnp.float32)
        hstack_ref[k * bc:(k + 1) * bc, :] = h_f32
        h = h_f32.astype(jnp.bfloat16)

    # ONE fused channel-mix matmul over all hops and all batches
    # (K = (gdep+1)*B*C) instead of gdep+1 tiny K=C matmuls per batch.
    h_all = hstack_ref[...].astype(jnp.bfloat16)
    acc = jnp.dot(w_ref[...], h_all, preferred_element_type=jnp.float32)
    o_ref[...] = (acc + b_ref[...]).astype(o_ref.dtype)


def mixprop_forward(x, adj, weight, bias, *, gdep, alpha):
    """x: [B, C, N, T], adj: [N, N], weight: [c_out, (gdep+1)*C], bias: [c_out]."""
    # TODO(synk): batched adjacency ([B,N,N] / [T,B,N,N]) nconv paths not implemented.
    B, C, N, T = x.shape
    c_out = weight.shape[0]
    NT = N * T
    NTp = ((NT + 127) // 128) * 128      # keep the lane dimension 128-aligned
    bc = B * C

    # Batch folded into the matmul M dimension, lane-dense last dim: (B*C, N*T).
    x_flat = x.reshape(bc, NT)

    # Graph propagation folded into one (NT, NT) right operand:
    #   a_eff[w*T+t, v*T+t'] = (1 - alpha) * A[v, w] * (t == t')
    # so that h_new = alpha*x + h @ a_eff is one 2-D matmul per hop.
    # TODO(synk): for large N*T this kron operand dominates VMEM; switch to an
    # [B*..., N, C*T]-style layout with a plain (N, N) operand at that scale.
    eye_t = jnp.eye(T, dtype=jnp.float32)
    a_eff = (1.0 - float(alpha)) * jnp.kron(adj.astype(jnp.float32).T, eye_t)

    if NTp != NT:
        x_flat = jnp.pad(x_flat, ((0, 0), (0, NTp - NT)))
        a_eff = jnp.pad(a_eff, ((0, NTp - NT), (0, NTp - NT)))
    a_eff = a_eff.astype(jnp.bfloat16)

    # Batch-block-diagonal 1x1-conv weight so the whole channel mix stays ONE
    # matmul even with the batch folded into rows:
    #   W_big[b*c_out + o, k*B*C + b'*C + c] = (b == b') * W[o, k*C + c]
    # TODO(synk): for large B switch to a per-batch channel mix to avoid the zeros.
    w_hop = weight.reshape(c_out, gdep + 1, C)                        # (o, k, c)
    w_big = (jnp.eye(B, dtype=jnp.float32)[:, None, None, :, None]
             * w_hop.astype(jnp.float32)[None, :, :, None, :])        # (B,o,k,B,c)
    w_big = w_big.reshape(B * c_out, (gdep + 1) * B * C).astype(jnp.bfloat16)

    bias_big = jnp.broadcast_to(bias.astype(jnp.float32),
                                (B, c_out)).reshape(B * c_out, 1)

    kernel = functools.partial(_mixprop_kernel, gdep=gdep, alpha=float(alpha),
                               bc=bc)

    def nbytes(shape, dtype):
        sz = 1
        for s in shape:
            sz *= int(s)
        return sz * jnp.dtype(dtype).itemsize

    block_bytes = (nbytes((bc, NTp), jnp.float32)
                   + nbytes((NTp, NTp), jnp.bfloat16)
                   + nbytes(w_big.shape, jnp.bfloat16)
                   + nbytes(bias_big.shape, jnp.float32)
                   + nbytes((B * c_out, NTp), x.dtype))
    scratch_bytes = nbytes(((gdep + 1) * bc, NTp), jnp.float32)
    vmem_limit = int(min(max(4 * block_bytes + scratch_bytes + (2 << 20),
                             4 << 20), 64 << 20))

    out_flat = pl.pallas_call(
        kernel,
        out_shape=jax.ShapeDtypeStruct((B * c_out, NTp), x.dtype),
        grid_spec=pltpu.PrefetchScalarGridSpec(
            num_scalar_prefetch=0,
            grid=(1,),   # whole problem in one program: no per-step grid overhead
            in_specs=[
                pl.BlockSpec((bc, NTp), lambda i: (0, 0)),
                pl.BlockSpec((NTp, NTp), lambda i: (0, 0)),
                pl.BlockSpec(w_big.shape, lambda i: (0, 0)),
                pl.BlockSpec(bias_big.shape, lambda i: (0, 0)),
            ],
            out_specs=pl.BlockSpec((B * c_out, NTp), lambda i: (0, 0)),
            scratch_shapes=[pltpu.VMEM(((gdep + 1) * bc, NTp), jnp.float32)],
        ),
        compiler_params=pltpu.CompilerParams(
            dimension_semantics=("arbitrary",),
            vmem_limit_bytes=vmem_limit,
        ),
    )(x_flat, a_eff, w_big, bias_big)

    return out_flat[:, :NT].reshape(B, c_out, N, T)


def mixprop_reference(x, adj, weight, bias, *, gdep, alpha):
    h = x
    outs = [h]
    for _ in range(gdep):
        hn = jnp.einsum("bcwt,vw->bcvt", h, adj)
        h = alpha * x + (1 - alpha) * hn
        outs.append(h)
    ho = jnp.concatenate(outs, axis=1)
    out = jnp.einsum("oj,bjnt->bont", weight, ho) + bias[None, :, None, None]
    return out


if __name__ == "__main__":
    B, C, N, T = 2, 4, 16, 8
    gdep, alpha = 2, 0.05
    c_out = 8

    key = jax.random.PRNGKey(0)
    kx, ka, kw, kb = jax.random.split(key, 4)

    x = jax.random.normal(kx, (B, C, N, T), dtype=jnp.float32)
    adj = jax.nn.softmax(jax.random.normal(ka, (N, N), dtype=jnp.float32), axis=-1)

    # Deterministic synthetic parameters for the 1x1 Conv2d (c_in=(gdep+1)*C).
    c_in_mlp = (gdep + 1) * C
    weight = (jax.random.normal(kw, (c_out, c_in_mlp), dtype=jnp.float32)
              * (1.0 / jnp.sqrt(c_in_mlp)))
    bias = jax.random.normal(kb, (c_out,), dtype=jnp.float32) * 0.1

    out = mixprop_forward(x, adj, weight, bias, gdep=gdep, alpha=alpha)
    out = jax.block_until_ready(out)

    ref = mixprop_reference(x, adj, weight, bias, gdep=gdep, alpha=alpha)
    assert out.shape == (B, c_out, N, T)
    # bf16 MXU operands (f32 accumulation) vs an all-f32 reference: tolerance
    # loosened from 1e-4 to 5e-2 per the review's correctness note.
    assert jnp.allclose(out, ref, atol=5e-2, rtol=5e-2), "mismatch vs reference"

    print("KERNEL_OK")
</pallas_src>

<mosaic_0001>
module attributes {stable_mosaic.version = 11 : i64} {
  func.func @_mixprop_kernel(%arg0: i32, %arg1: memref<8x128xf32, #tpu.memory_space<vmem>>, %arg2: memref<128x128xbf16, #tpu.memory_space<vmem>>, %arg3: memref<16x24xbf16, #tpu.memory_space<vmem>>, %arg4: memref<16x1xf32, #tpu.memory_space<vmem>>, %arg5: memref<16x128xf32, #tpu.memory_space<vmem>>, %arg6: memref<24x128xf32, #tpu.memory_space<vmem>>) attributes {dimension_semantics = [#tpu.dimension_semantics<arbitrary>], iteration_bounds = array<i64: 1>, scalar_prefetch = 0 : i64, scratch_operands = 1 : i64, tpu.core_type = #tpu.core_type<tc>, window_params = [{pipeline_mode = #tpu.pipeline_mode<synchronous>, transform_indices = @transform_0, window_bounds = array<i64: 8, 128>}, {pipeline_mode = #tpu.pipeline_mode<synchronous>, transform_indices = @transform_1, window_bounds = array<i64: 128, 128>}, {pipeline_mode = #tpu.pipeline_mode<synchronous>, transform_indices = @transform_2, window_bounds = array<i64: 16, 24>}, {pipeline_mode = #tpu.pipeline_mode<synchronous>, transform_indices = @transform_3, window_bounds = array<i64: 16, 1>}, {pipeline_mode = #tpu.pipeline_mode<synchronous>, transform_indices = @transform_4, window_bounds = array<i64: 16, 128>}]} {
    %c0 = arith.constant 0 : index
    %c0_0 = arith.constant 0 : index
    %0 = vector.load %arg1[%c0, %c0_0] : memref<8x128xf32, #tpu.memory_space<vmem>>, vector<8x128xf32>
    %c0_1 = arith.constant 0 : index
    %c0_2 = arith.constant 0 : index
    %1 = vector.load %arg2[%c0_1, %c0_2] : memref<128x128xbf16, #tpu.memory_space<vmem>>, vector<128x128xbf16>
    %cst = arith.constant 5.000000e-02 : f32
    %2 = vector.broadcast %cst : f32 to vector<8x128xf32>
    %3 = arith.mulf %2, %0 : vector<8x128xf32>
    %c0_3 = arith.constant 0 : index
    %c0_4 = arith.constant 0 : index
    %4 = vector.load %arg6[%c0_3, %c0_4] : memref<24x128xf32, #tpu.memory_space<vmem>>, vector<8x128xf32>
    tpu.vector_store %arg6[%c0_3, %c0_4], %0 {strides = array<i32>} : memref<24x128xf32, #tpu.memory_space<vmem>>, vector<8x128xf32>,
    %5 = arith.truncf %0 : vector<8x128xf32> to vector<8x128xbf16>
    %cst_5 = arith.constant dense<0.000000e+00> : vector<8x128xf32>
    %6 = tpu.matmul %5, %1, %cst_5 {dimension_numbers = #tpu.dot_dimension_numbers<[1], [0], [0], [1], [0, 0, 1, 1], [], []>} : vector<8x128xbf16>, vector<128x128xbf16>, vector<8x128xf32> -> vector<8x128xf32>
    %7 = arith.addf %3, %6 : vector<8x128xf32>
    %c8 = arith.constant 8 : index
    %c0_6 = arith.constant 0 : index
    %8 = vector.load %arg6[%c8, %c0_6] : memref<24x128xf32, #tpu.memory_space<vmem>>, vector<8x128xf32>
    tpu.vector_store %arg6[%c8, %c0_6], %7 {strides = array<i32>} : memref<24x128xf32, #tpu.memory_space<vmem>>, vector<8x128xf32>,
    %9 = arith.truncf %7 : vector<8x128xf32> to vector<8x128xbf16>
    %cst_7 = arith.constant dense<0.000000e+00> : vector<8x128xf32>
    %10 = tpu.matmul %9, %1, %cst_7 {dimension_numbers = #tpu.dot_dimension_numbers<[1], [0], [0], [1], [0, 0, 1, 1], [], []>} : vector<8x128xbf16>, vector<128x128xbf16>, vector<8x128xf32> -> vector<8x128xf32>
    %11 = arith.addf %3, %10 : vector<8x128xf32>
    %c16 = arith.constant 16 : index
    %c0_8 = arith.constant 0 : index
    %12 = vector.load %arg6[%c16, %c0_8] : memref<24x128xf32, #tpu.memory_space<vmem>>, vector<8x128xf32>
    tpu.vector_store %arg6[%c16, %c0_8], %11 {strides = array<i32>} : memref<24x128xf32, #tpu.memory_space<vmem>>, vector<8x128xf32>,
    %c0_9 = arith.constant 0 : index
    %c0_10 = arith.constant 0 : index
    %13 = vector.load %arg6[%c0_9, %c0_10] : memref<24x128xf32, #tpu.memory_space<vmem>>, vector<24x128xf32>
    %14 = arith.truncf %13 : vector<24x128xf32> to vector<24x128xbf16>
    %c0_11 = arith.constant 0 : index
    %c0_12 = arith.constant 0 : index
    %15 = vector.load %arg3[%c0_11, %c0_12] : memref<16x24xbf16, #tpu.memory_space<vmem>>, vector<16x24xbf16>
    %cst_13 = arith.constant dense<0.000000e+00> : vector<16x128xf32>
    %16 = tpu.matmul %15, %14, %cst_13 {dimension_numbers = #tpu.dot_dimension_numbers<[1], [0], [0], [1], [0, 0, 1, 1], [], []>} : vector<16x24xbf16>, vector<24x128xbf16>, vector<16x128xf32> -> vector<16x128xf32>
    %c0_14 = arith.constant 0 : index
    %c0_15 = arith.constant 0 : index
    %17 = vector.load %arg4[%c0_14, %c0_15] : memref<16x1xf32, #tpu.memory_space<vmem>>, vector<16x1xf32>
    %18 = vector.broadcast %17 : vector<16x1xf32> to vector<16x128xf32>
    %19 = arith.addf %16, %18 : vector<16x128xf32>
    %c0_16 = arith.constant 0 : index
    %c0_17 = arith.constant 0 : index
    %20 = vector.load %arg5[%c0_16, %c0_17] : memref<16x128xf32, #tpu.memory_space<vmem>>, vector<16x128xf32>
    tpu.vector_store %arg5[%c0_16, %c0_17], %19 {strides = array<i32>} : memref<16x128xf32, #tpu.memory_space<vmem>>, vector<16x128xf32>,
    return
  }
  func.func @transform_0(%arg0: i32) -> (i32, i32) {
    %c0_i32 = arith.constant 0 : i32
    %c0_i32_0 = arith.constant 0 : i32
    %c0_i32_1 = arith.constant 0 : i32
    return %c0_i32, %c0_i32_0 : i32, i32
  }
  func.func @transform_1(%arg0: i32) -> (i32, i32) {
    %c0_i32 = arith.constant 0 : i32
    %c0_i32_0 = arith.constant 0 : i32
    %c0_i32_1 = arith.constant 0 : i32
    return %c0_i32, %c0_i32_0 : i32, i32
  }
  func.func @transform_2(%arg0: i32) -> (i32, i32) {
    %c0_i32 = arith.constant 0 : i32
    %c0_i32_0 = arith.constant 0 : i32
    %c0_i32_1 = arith.constant 0 : i32
    return %c0_i32, %c0_i32_0 : i32, i32
  }
  func.func @transform_3(%arg0: i32) -> (i32, i32) {
    %c0_i32 = arith.constant 0 : i32
    %c0_i32_0 = arith.constant 0 : i32
    %c0_i32_1 = arith.constant 0 : i32
    return %c0_i32, %c0_i32_0 : i32, i32
  }
  func.func @transform_4(%arg0: i32) -> (i32, i32) {
    %c0_i32 = arith.constant 0 : i32
    %c0_i32_0 = arith.constant 0 : i32
    %c0_i32_1 = arith.constant 0 : i32
    return %c0_i32, %c0_i32_0 : i32, i32
  }
}

</mosaic_0001>

<bundles_post_ra>
// kernel: tpu_custom_call.1
= control target key start
LH: loop header
LB: loop body
LE: loop exit
PB: predicated region body
PF: predicated region fallthrough
CT: control target
= control target key end

     0   :  { %9 = vsyncpa [#allocation4], 0  ;;  %s496_s0 = inlined_call_operand.vmem [shape: f32[8,128], index: 0, kind: input, shape index: {}]   ;;  %s497_s1 = inlined_call_operand.hbm [shape: bf16[128,128], index: 1, kind: input, shape index: {}]   ;;  %s498_s2 = inlined_call_operand.vmem [shape: bf16[16,24], index: 2, kind: input, shape index: {}]   ;;  %s499_s3 = inlined_call_operand.vmem [shape: f32[16,1], index: 3, kind: input, shape index: {}]   ;;  %s500_s4 = inlined_call_operand.hbm [shape: f32[16,128], index: 4, kind: output, shape index: {}]  }
   0x1   :  { %10 = vsyncpa [#allocation5], 0  ;;  %s420_s15 = smov [#allocation3]  }
   0x2   :  { %s18_s16 = sshll.u32 %s420_s15, 4  ;;  %s19_s16 = int_to_ptr.vmem [resolvable:$true] %s18_s16 }
   0x3   :  { %s384_s17 = scalar_lea.vmem %s19_s16, 1024  ;;  %p389_p1 = scmp.lt.s32.totalorder %s19_s16, %s19_s16 }
   0x4   :  { %p385_p0 = scmp.ne.s32.totalorder %s19_s16, %s384_s17  ;;  %p390_p2 = scmp.lt.s32.totalorder %s384_s17, %s384_s17 }
   0x6   :  { %p391_p3 = por %p390_p2, %p389_p1 }
   0x8   :  { %p392_p4 = pnand %p391_p3, %p385_p0 }
   0xa   :  { %395 = shalt.err (!%p392_p4)
}
   0xb   :  { %s421_s18 = smov 64   ;;  %s422_s19 = smov 4  }
   0xc   :  { %24 = dma.hbm_to_vmem [thread:$0]  %s497_s1, 1024, %s19_s16, [#allocation4], %s421_s18, %s421_s18, %s422_s19  }
   0xd   :  { %416 = dma.done.wait [#allocation4], 1024  }
   0xe   :  { %417 = vsyncadd [#allocation4], 4294966272  ;;  %v423_v0 = vmov 0.0   ;;  %vm424_vm0 = vmmov 0   ;;  %v367_v1 = vld [vmem:[#allocation3 + $0x38] sm:$0xff]   ;;  %v368_v2 = vld [vmem:[#allocation3 + $0x30] sm:$0xff]  }
   0xf   :  { %309 = vmatprep.subr.bf16.mxu0 %v423_v0  ;;  %325 = vmatprep.mubr.msk.bf16.mxu0 %vm424_vm0, %v423_v0  ;;  %v369_v3 = vld [vmem:[#allocation3 + $0x28] sm:$0xff]   ;;  %v370_v4 = vld [vmem:[#allocation3 + $0x20] sm:$0xff]   ;;  %v371_v5 = vld [vmem:[#allocation3 + $0x18] sm:$0xff]   ;;  %v425_v19 = vmov 0   ;;  %vm214_vm1 = vcmask 1043456   ;;  %vm210_vm2 = vcmask 195584  }
  0x10   :  { %329 = vmatprep.subr.bf16.mxu1 %v423_v0  ;;  %345 = vmatprep.mubr.msk.bf16.mxu1 %vm424_vm0, %v423_v0  ;;  %v372_v6 = vld [vmem:[#allocation3 + $0x10] sm:$0xff]   ;;  %v373_v7 = vld [vmem:[#allocation3 + $0x8] sm:$0xff]   ;;  %v374_v8 = vld [vmem:[#allocation3] sm:$0xff]  }
  0x11   :  { %310 = vmatpush3.bf16.msra.mxu0 %v367_v1  ;;  %330 = vmatpush3.bf16.msra.mxu1 %v367_v1  ;;  %v33_v9 = vld [vmem:[%s496_s0] sm:$0xff]  ;;  %v194_v20 = vld [vmem:[%s499_s3 + $0x8] sm:$0xff] }
  0x12   :  { %311 = vmatprep.subr.bf16.mxu0 %v423_v0  ;;  %331 = vmatprep.subr.bf16.mxu1 %v423_v0  ;;  %v52_v10 = vpack.c.bf16 %v33_v9, %v33_v9  ;;  %v50_v11 = vmul.f32 0.05, %v33_v9  ;;  %v193_v18 = vld [vmem:[%s499_s3] sm:$0xff]  ;;  %s426_s3 = smov [#allocation6]  }
  0x13   :  { %366 = vset.pattern.permute.xlu0 %v425_v19  ;;  %v375_v29 = vld [vmem:[%s498_s2] sm:$0xff]   ;;  %s266_s28 = sshll.u32 %s426_s3, 4  ;;  %s267_s28 = int_to_ptr.vmem [resolvable:$true] %s266_s28 }
  0x14   :  { %197 = vperm.xlu0 %366, %v193_v18   ;;  %s396_s29 = scalar_lea.vmem %s267_s28, 256  ;;  %p401_p6 = scmp.lt.s32.totalorder %s267_s28, %s267_s28 }
  0x15   :  { %312 = vmatpush3.bf16.msra.mxu0 %v368_v2  ;;  %332 = vmatpush3.bf16.msra.mxu1 %v368_v2  ;;  %p397_p5 = scmp.ne.s32.totalorder %s267_s28, %s396_s29  ;;  %p402_p7 = scmp.lt.s32.totalorder %s396_s29, %s396_s29 }
  0x16   :  { %313 = vmatprep.subr.bf16.mxu0 %v423_v0  ;;  %333 = vmatprep.subr.bf16.mxu1 %v423_v0 }
  0x17   :  { %p403_p8 = por %p402_p7, %p401_p6 }
  0x18   :  { %202 = vperm.xlu0 %366, %v194_v20  }
  0x19   :  { %314 = vmatpush3.bf16.msra.mxu0 %v369_v3  ;;  %334 = vmatpush3.bf16.msra.mxu1 %v369_v3  ;;  %p404_p9 = pnand %p403_p8, %p397_p5 }
  0x1a   :  { %315 = vmatprep.subr.bf16.mxu0 %v423_v0  ;;  %335 = vmatprep.subr.bf16.mxu1 %v423_v0 }
  0x1d   :  { %316 = vmatpush3.bf16.msra.mxu0 %v370_v4  ;;  %336 = vmatpush3.bf16.msra.mxu1 %v370_v4 }
  0x1e   :  { %317 = vmatprep.subr.bf16.mxu0 %v423_v0  ;;  %337 = vmatprep.subr.bf16.mxu1 %v423_v0 }
  0x21   :  { %318 = vmatpush3.bf16.msra.mxu0 %v371_v5  ;;  %338 = vmatpush3.bf16.msra.mxu1 %v371_v5 }
  0x22   :  { %319 = vmatprep.subr.bf16.mxu0 %v423_v0  ;;  %339 = vmatprep.subr.bf16.mxu1 %v423_v0 }
  0x25   :  { %320 = vmatpush3.bf16.msra.mxu0 %v372_v6  ;;  %340 = vmatpush3.bf16.msra.mxu1 %v372_v6 }
  0x26   :  { %321 = vmatprep.subr.bf16.mxu0 %v423_v0  ;;  %341 = vmatprep.subr.bf16.mxu1 %v423_v0 }
  0x29   :  { %322 = vmatpush3.bf16.msra.mxu0 %v373_v7  ;;  %342 = vmatpush3.bf16.msra.mxu1 %v373_v7 }
  0x2a   :  { %323 = vmatprep.subr.bf16.mxu0 %v423_v0  ;;  %343 = vmatprep.subr.bf16.mxu1 %v423_v0 }
  0x2d   :  { %324 = vmatpush3.bf16.msra.mxu0 %v374_v8  ;;  %344 = vmatpush3.bf16.msra.mxu1 %v374_v8 }
  0x2e   :  { %349 = vmatprep.subr.bf16.mxu0 %v423_v0 }
  0x30   :  { %326 = vmatmul.mubr.bf16.vlgmr.msra.gmra.mxu0 %v52_v10 }
  0x31   :  { %353 = vmatprep.mubr.msk.bf16.mxu0 %vm424_vm0, %v423_v0 }
  0x8f   :  { %v198_v30 = vpop.permute.xlu0 %197 }
  0x93   :  { %v203_v34 = vpop.permute.xlu0 %202 }
  0xf0   :  { %v135_v12 = vpop.f32.mrf.mxu0 }
  0xf1   :  { %v141_v13 = vadd.f32 %v135_v12, %v50_v11 }
  0xf2   :  { %v327_v14 = vpop.f32.mrf.mxu0 }
  0xf3   :  { %v143_v15 = vpack.c.bf16 %v141_v13, %v141_v13  ;;  %v189_v28 = vpack.c.bf16 %v141_v13, %v33_v9 }
  0xf4   :  { %v138_v16 = vpop.f32.mrf.mxu0 }
  0xf5   :  { %346 = vmatmul.mubr.bf16.vlgmr.msra.gmra.mxu1 %v143_v15 }
  0xf6   :  { %v328_v17 = vpop.f32.mrf.mxu0 }
 0x1b5   :  { %v178_v21 = vpop.f32.mrf.mxu1 }
 0x1b6   :  { %v184_v22 = vadd.f32 %v178_v21, %v50_v11 }
 0x1b7   :  { %v347_v23 = vpop.f32.mrf.mxu1 }
 0x1b8   :  { %v190_v24 = vpack.c.bf16 %v184_v22, %v184_v22 }
 0x1b9   :  { %v181_v25 = vpop.f32.mrf.mxu1 }
 0x1ba   :  { %v216_v26 = vsel %vm214_vm1, %v190_v24, 0 }
 0x1bb   :  { %v348_v27 = vpop.f32.mrf.mxu1  ;;  %350 = vmatpush3.bf16.msra.mxu0 %v216_v26 }
 0x1bc   :  { %351 = vmatprep.subr.bf16.mxu0 %v423_v0 }
 0x1bf   :  { %352 = vmatpush3.bf16.msra.mxu0 %v189_v28 }
 0x1c2   :  { %354 = vmatmul.mubr.msk.bf16.vlgmr.msra.gmra.mxu0 %vm210_vm2, %v375_v29 }
 0x282   :  { %v252_v31 = vpop.f32.mrf.mxu0 }
 0x283   :  { %v253_v32 = vadd.f32 %v252_v31, %v198_v30 }
 0x284   :  { %v355_v33 = vpop.f32.mrf.mxu0 }
 0x285   :  { %259 = vst [vmem:[#allocation6] sm:$0xff] %v253_v32 }
 0x286   :  { %v255_v35 = vpop.f32.mrf.mxu0 }
 0x287   :  { %v256_v36 = vadd.f32 %v255_v35, %v203_v34 }
 0x288   :  { %v356_v37 = vpop.f32.mrf.mxu0 }
 0x289   :  { %260 = vst [vmem:[#allocation6 + $0x8] sm:$0xff] %v256_v36 }
 0x28a   :  { %407 = shalt.err (!%p404_p9)
}
 0x28b   :  { %s427_s2 = smov 128   ;;  %s428_s30 = smov 8  }
 0x28c   :  { %272 = dma.vmem_to_hbm [thread:$0]  %s267_s28, 256, %s500_s4, [#allocation5], %s427_s2, %s427_s2, %s428_s30  }
 0x28d   :  { %418 = dma.done.wait [#allocation5], 256  }
 0x28e   :  { %419 = vsyncadd [#allocation5], 4294967040 }
 0x28f   :  { %276 = vsyncpa [#allocation4], 1 }
 0x290   :  { %277 = vsyncpa [#allocation5], 1 }

</bundles_post_ra>
